<compile_context>
chip_gen: v5e
topology: v5e:2x2
jax: 0.10.0
libtpu: 0.0.40
codegen_flags: <defaults>
</compile_context>

<pallas_src>
import functools

import jax
import jax.numpy as jnp
from jax import lax
from jax.experimental import pallas as pl
from jax.experimental.pallas import tpu as pltpu


def _round_up(a: int, b: int) -> int:
    return (a + b - 1) // b * b


def _lora_conv1d_kernel(x_hbm, w_ref, b_ref, o_ref, xbuf, xstk, sem, *,
                        n_taps, stride, c_in_p, tile_l, tile_in):
    """One (batch, L-tile) grid step.

    x_hbm : (N, stride*c_in_p, J)  phase-folded padded input, left in HBM (pl.ANY)
    w_ref : (c_out_p, n_taps*c_in_p)  folded (base + scaled LoRA) weights, resident
    b_ref : (c_out_p, 1)              conv bias (f32), resident
    o_ref : (c_out_p, tile_l)         lane-dense NCL output tile
    xbuf  : (2, stride*c_in_p, tile_in) VMEM double buffer for manual x DMA
    xstk  : (n_taps*c_in_p, tile_l)     stacked-contraction operand (VMEM im2col)
    sem   : DMA semaphores, one per buffer slot
    """
    n = pl.program_id(0)
    i = pl.program_id(1)
    n_tiles = pl.num_programs(1)
    slot = i % 2

    def tile_copy(tile_idx, slot_idx):
        start = pl.multiple_of(tile_idx * tile_l, 128)
        return pltpu.make_async_copy(
            x_hbm.at[n, :, pl.ds(start, tile_in)],
            xbuf.at[slot_idx],
            sem.at[slot_idx])

    # Prime the double buffer at the first L-tile of every batch row.
    @pl.when(i == 0)
    def _():
        tile_copy(i, slot).start()

    # Wait for the current tile, then immediately prefetch the next one so its
    # HBM traffic overlaps this tile's compute.
    tile_copy(i, slot).wait()

    @pl.when(i + 1 < n_tiles)
    def _():
        tile_copy(i + 1, 1 - slot).start()

    # im2col inside VMEM: stack the K taps along the contraction axis so the whole
    # conv is a single MXU dot of depth n_taps*c_in_p (one f32 accumulation).
    for k in range(n_taps):
        ph, d = k % stride, k // stride           # static tap phase / lane shift
        xstk[pl.ds(k * c_in_p, c_in_p), :] = xbuf[slot,
                                                  pl.ds(ph * c_in_p, c_in_p),
                                                  pl.ds(d, tile_l)]

    acc = jnp.dot(w_ref[...], xstk[...], preferred_element_type=jnp.float32)
    o_ref[...] = (acc + b_ref[...]).astype(o_ref.dtype)


def lora_conv1d_forward(x, w_base, b_base, w_A, w_B, *, stride, padding,
                        lora_alpha, compute_dtype=None, tile_l=None):
    """x: (N, C_in, L) NCL.  Returns (N, C_out, L_out) NCL in x.dtype."""
    N, C_in, L = x.shape
    C_out, _, K = w_base.shape
    r = w_A.shape[0]
    s, p = int(stride), int(padding)
    scaling = float(lora_alpha) / float(r)
    L_out = (L + 2 * p - K) // s + 1
    out_dtype = x.dtype
    if compute_dtype is None:
        compute_dtype = x.dtype
    cdt = jnp.dtype(compute_dtype)
    odt = jnp.dtype(out_dtype)

    # 1. Fold LoRA into the base conv weights in f32 (exact: forward is linear).
    #    W_eff[o,i,k] = W_base[o,i,k] + scaling * sum_r W_B[o,r,0] * W_A[r,i,k]
    w_eff = (w_base.astype(jnp.float32) + scaling *
             jnp.einsum('or,rik->oik', w_B[:, :, 0].astype(jnp.float32),
                        w_A.astype(jnp.float32)))

    # 2. Geometry: dtype-aware channel alignment and generation-aware L tiling.
    pack_c = max(8, 32 // cdt.itemsize)          # 8 f32 / 16 bf16 / 32 int8
    pack_o = max(8, 32 // odt.itemsize)
    C_in_p = _round_up(C_in, pack_c)
    C_out_p = _round_up(C_out, max(pack_c, pack_o))
    halo = (K - 1) // s                          # extra phase-space columns per tile

    try:
        vmem_cap = int(pltpu.get_tpu_info().vmem_capacity_bytes)
    except Exception:                            # noqa: BLE001 - conservative fallback
        vmem_cap = 64 * 1024 * 1024              # v7x-safe default
    budget = min(int(vmem_cap * 0.6), 96 * 1024 * 1024)

    def working_set(tl):
        ti = _round_up(tl + halo, 128)
        return (2 * s * C_in_p * ti * cdt.itemsize       # manual x double buffer
                + K * C_in_p * tl * cdt.itemsize         # stacked-contraction scratch
                + 2 * C_out_p * tl * odt.itemsize        # pipelined output blocks
                + C_out_p * tl * 4                       # f32 matmul result
                + K * C_in_p * C_out_p * cdt.itemsize    # resident folded weights
                + C_out_p * 4)                           # bias

    if tile_l is None:
        tile_l = 1024 if budget >= 60 * 1024 * 1024 else 512   # v5e/v6e vs v7x
    tile_l = max(128, _round_up(int(tile_l), 128))
    tile_l = min(tile_l, _round_up(L_out, 128))
    while tile_l > 128 and working_set(tile_l) > budget:
        tile_l -= 128

    tile_in = _round_up(tile_l + halo, 128)      # lane-dense (unmasked) input window
    T = -(-L_out // tile_l)
    L_out_pad = T * tile_l
    J = (T - 1) * tile_l + tile_in               # phase-folded length the DMAs read
    Lp = J * s

    # 3. Single pad pass: conv zero padding + channel/length alignment.  No gather
    #    or per-tile HBM im2col any more -- haloed windows are DMA'd from x_ph.
    extra = Lp - (L + 2 * p)
    x_p = jnp.pad(x, ((0, 0), (0, C_in_p - C_in), (p, p + max(extra, 0))))
    if extra < 0:
        x_p = x_p[:, :, :Lp]                     # tail never read by valid outputs

    # 4. Phase-fold the stride (identity when s == 1) so every tap is a contiguous
    #    static lane shift inside the kernel:
    #    x_ph[n, ph*C_in_p + c, j] = x_p[n, c, j*s + ph]
    if s == 1:
        x_ph = x_p
    else:
        x_ph = x_p.reshape(N, C_in_p, J, s).transpose(0, 3, 1, 2).reshape(
            N, s * C_in_p, J)
    x_ph = x_ph.astype(cdt)

    # 5. Weights / bias in kernel layout: stacked (C_out_p, K*C_in_p) contraction.
    w_eff_p = jnp.pad(w_eff, ((0, C_out_p - C_out), (0, C_in_p - C_in), (0, 0)))
    w2d = jnp.transpose(w_eff_p, (0, 2, 1)).reshape(C_out_p, K * C_in_p).astype(cdt)
    bias_col = jnp.pad(b_base.astype(jnp.float32),
                       (0, C_out_p - C_out)).reshape(C_out_p, 1)

    ws = working_set(tile_l)
    vmem_limit = int(max(min(2 * ws, budget), ws + (6 << 20), 32 << 20))

    cost = pl.CostEstimate(
        flops=2 * N * T * tile_l * (K * C_in_p) * C_out_p,
        transcendentals=0,
        bytes_accessed=int(N * s * C_in_p * J * cdt.itemsize
                           + K * C_in_p * C_out_p * cdt.itemsize + C_out_p * 4
                           + N * C_out_p * L_out_pad * odt.itemsize))

    out = pl.pallas_call(
        functools.partial(_lora_conv1d_kernel, n_taps=K, stride=s,
                          c_in_p=C_in_p, tile_l=tile_l, tile_in=tile_in),
        out_shape=jax.ShapeDtypeStruct((N, C_out_p, L_out_pad), out_dtype),
        grid_spec=pltpu.PrefetchScalarGridSpec(
            num_scalar_prefetch=0,
            grid=(N, T),
            in_specs=[
                pl.BlockSpec(memory_space=pl.ANY),                  # x stays in HBM
                pl.BlockSpec((C_out_p, K * C_in_p), lambda n, i: (0, 0)),
                pl.BlockSpec((C_out_p, 1), lambda n, i: (0, 0)),
            ],
            out_specs=pl.BlockSpec((None, C_out_p, tile_l),
                                   lambda n, i: (n, 0, i)),
            scratch_shapes=[
                pltpu.VMEM((2, s * C_in_p, tile_in), cdt),
                pltpu.VMEM((K * C_in_p, tile_l), cdt),
                pltpu.SemaphoreType.DMA((2,)),
            ]),
        compiler_params=pltpu.CompilerParams(
            dimension_semantics=("parallel", "arbitrary"),
            vmem_limit_bytes=vmem_limit),
        cost_estimate=cost,
    )(x_ph, w2d, bias_col)

    # Output is already NCL and lane-dense; just drop channel / length padding.
    return out[:, :C_out, :L_out]


def _reference(x, w_base, b_base, w_A, w_B, *, stride, padding, lora_alpha):
    """Pure-JAX reference using lax.conv_general_dilated (NCL layout)."""
    r = w_A.shape[0]
    scaling = float(lora_alpha) / float(r)
    dn = ("NCH", "OIH", "NCH")

    def conv(inp, w, s, p):
        return lax.conv_general_dilated(inp, w, window_strides=(s,),
                                        padding=[(p, p)],
                                        dimension_numbers=dn)

    base = conv(x, w_base, stride, padding) + b_base[None, :, None]
    a = conv(x, w_A, stride, padding)
    lora = conv(a, w_B, 1, 0)
    return base + scaling * lora


if __name__ == "__main__":
    def run_case(name, N, C_in, C_out, L, K, stride, padding, r, lora_alpha,
                 compute_dtype, tol, tile_l=None):
        key = jax.random.PRNGKey(0)
        kx, kw, kb, ka, kB = jax.random.split(key, 5)
        x = jax.random.normal(kx, (N, C_in, L), dtype=jnp.float32)
        w_base = jax.random.normal(kw, (C_out, C_in, K), dtype=jnp.float32) * 0.1
        b_base = jax.random.normal(kb, (C_out,), dtype=jnp.float32) * 0.1
        std_A = (2.0 / (C_in * K + r * K)) ** 0.5      # xavier-normal-style
        std_B = (2.0 / (r + C_out)) ** 0.5
        w_A = jax.random.normal(ka, (r, C_in, K), dtype=jnp.float32) * std_A
        w_B = jax.random.normal(kB, (C_out, r, 1), dtype=jnp.float32) * std_B

        ref = _reference(x, w_base, b_base, w_A, w_B, stride=stride,
                         padding=padding, lora_alpha=lora_alpha)
        fwd = jax.jit(functools.partial(
            lora_conv1d_forward, stride=stride, padding=padding,
            lora_alpha=lora_alpha, compute_dtype=compute_dtype, tile_l=tile_l))
        out = jax.block_until_ready(fwd(x, w_base, b_base, w_A, w_B))
        L_out = (L + 2 * padding - K) // stride + 1
        assert out.shape == (N, C_out, L_out), f"{name}: bad shape {out.shape}"
        assert jnp.allclose(out, ref, atol=tol, rtol=tol), f"{name}: mismatch"

    # Module-consistent small shapes: batch=2, C_in=8, C_out=8, L=16,
    # kernel_size=3, padding=1, r=4, lora_alpha=8.
    run_case("f32_s1", 2, 8, 8, 16, 3, 1, 1, 4, 8, jnp.float32, 1e-4)
    # Strided conv (exercises the phase fold).
    run_case("f32_s2", 2, 8, 8, 16, 3, 2, 1, 4, 8, jnp.float32, 1e-4)
    # Multi-tile L (exercises the manual double-buffered halo DMAs across tiles).
    run_case("f32_multi_tile", 2, 8, 8, 1000, 3, 1, 1, 4, 8, jnp.float32, 1e-4,
             tile_l=256)
    # bf16 MXU operands with f32 accumulation (16-row channel alignment path).
    run_case("bf16_s1", 2, 8, 8, 16, 3, 1, 1, 4, 8, jnp.bfloat16, 5e-2)

    print("KERNEL_OK")
</pallas_src>

<mosaic_0001>
module attributes {stable_mosaic.version = 11 : i64} {
  func.func @_lora_conv1d_kernel(%arg0: i32, %arg1: i32, %arg2: memref<2x8x256xf32, #tpu.memory_space<any>>, %arg3: memref<8x24xf32, #tpu.memory_space<vmem>>, %arg4: memref<8x1xf32, #tpu.memory_space<vmem>>, %arg5: memref<1x8x128xf32, #tpu.memory_space<vmem>>, %arg6: memref<2x8x256xf32, #tpu.memory_space<vmem>>, %arg7: memref<24x128xf32, #tpu.memory_space<vmem>>, %arg8: memref<2x!tpu.dma_semaphore, #tpu.memory_space<semaphore_mem>>) attributes {dimension_semantics = [#tpu.dimension_semantics<parallel>, #tpu.dimension_semantics<arbitrary>], iteration_bounds = array<i64: 2, 1>, scalar_prefetch = 0 : i64, scratch_operands = 3 : i64, tpu.core_type = #tpu.core_type<tc>, window_params = [{}, {pipeline_mode = #tpu.pipeline_mode<synchronous>, transform_indices = @transform_1, window_bounds = array<i64: 8, 24>}, {pipeline_mode = #tpu.pipeline_mode<synchronous>, transform_indices = @transform_2, window_bounds = array<i64: 8, 1>}, {transform_indices = @transform_3, window_bounds = array<i64: 1, 8, 128>}]} {
    %c2_i32 = arith.constant 2 : i32
    %c0_i32 = arith.constant 0 : i32
    %0 = arith.cmpi eq, %c2_i32, %c0_i32 : i32
    %c1_i32 = arith.constant 1 : i32
    %1 = arith.select %0, %c1_i32, %c2_i32 : i32
    %2 = arith.remsi %arg1, %1 : i32
    %c0_i32_0 = arith.constant 0 : i32
    %3 = arith.cmpi ne, %2, %c0_i32_0 : i32
    %c0_i32_1 = arith.constant 0 : i32
    %4 = arith.cmpi slt, %2, %c0_i32_1 : i32
    %c0_i32_2 = arith.constant 0 : i32
    %5 = arith.cmpi slt, %1, %c0_i32_2 : i32
    %6 = arith.xori %4, %5 : i1
    %7 = arith.andi %6, %3 : i1
    %8 = arith.addi %2, %1 : i32
    %9 = arith.select %7, %8, %2 : i32
    %c0_i32_3 = arith.constant 0 : i32
    %10 = arith.cmpi eq, %arg1, %c0_i32_3 : i32
    %11 = arith.extui %10 : i1 to i32
    %c0_i32_4 = arith.constant 0 : i32
    %12 = arith.cmpi ne, %11, %c0_i32_4 : i32
    scf.if %12 {
      %c128_i32_27 = arith.constant 128 : i32
      %46 = arith.muli %arg1, %c128_i32_27 : i32
      %47 = tpu.assume_multiple %46, 128 : i32
      %c0_i32_28 = arith.constant 0 : i32
      %48 = tpu.memref_slice %arg2[%arg0, %c0_i32_28, %47] : memref<2x8x256xf32, #tpu.memory_space<any>> -> memref<1x8x256xf32, #tpu.memory_space<any>>
      %49 = tpu.memref_squeeze %48 : memref<1x8x256xf32, #tpu.memory_space<any>> -> memref<8x256xf32, #tpu.memory_space<any>>
      %c0_i32_29 = arith.constant 0 : i32
      %c0_i32_30 = arith.constant 0 : i32
      %50 = tpu.memref_slice %arg6[%9, %c0_i32_29, %c0_i32_30] : memref<2x8x256xf32, #tpu.memory_space<vmem>> -> memref<1x8x256xf32, #tpu.memory_space<vmem>>
      %51 = tpu.memref_squeeze %50 : memref<1x8x256xf32, #tpu.memory_space<vmem>> -> memref<8x256xf32, #tpu.memory_space<vmem>>
      %52 = tpu.memref_slice %arg8[%9] : memref<2x!tpu.dma_semaphore, #tpu.memory_space<semaphore_mem>> -> memref<1x!tpu.dma_semaphore, #tpu.memory_space<semaphore_mem>>
      %53 = tpu.memref_squeeze %52 : memref<1x!tpu.dma_semaphore, #tpu.memory_space<semaphore_mem>> -> memref<!tpu.dma_semaphore, #tpu.memory_space<semaphore_mem>>
      tpu.enqueue_dma source(%49 : memref<8x256xf32, #tpu.memory_space<any>>) target(%51 : memref<8x256xf32, #tpu.memory_space<vmem>>) target_semaphore(%53 : memref<!tpu.dma_semaphore, #tpu.memory_space<semaphore_mem>>)
    } else {
    }
    %c128_i32 = arith.constant 128 : i32
    %13 = arith.muli %arg1, %c128_i32 : i32
    %14 = tpu.assume_multiple %13, 128 : i32
    %c0_i32_5 = arith.constant 0 : i32
    %15 = tpu.memref_slice %arg2[%arg0, %c0_i32_5, %14] : memref<2x8x256xf32, #tpu.memory_space<any>> -> memref<1x8x256xf32, #tpu.memory_space<any>>
    %16 = tpu.memref_squeeze %15 : memref<1x8x256xf32, #tpu.memory_space<any>> -> memref<8x256xf32, #tpu.memory_space<any>>
    %c0_i32_6 = arith.constant 0 : i32
    %c0_i32_7 = arith.constant 0 : i32
    %17 = tpu.memref_slice %arg6[%9, %c0_i32_6, %c0_i32_7] : memref<2x8x256xf32, #tpu.memory_space<vmem>> -> memref<1x8x256xf32, #tpu.memory_space<vmem>>
    %18 = tpu.memref_squeeze %17 : memref<1x8x256xf32, #tpu.memory_space<vmem>> -> memref<8x256xf32, #tpu.memory_space<vmem>>
    %19 = tpu.memref_slice %arg8[%9] : memref<2x!tpu.dma_semaphore, #tpu.memory_space<semaphore_mem>> -> memref<1x!tpu.dma_semaphore, #tpu.memory_space<semaphore_mem>>
    %20 = tpu.memref_squeeze %19 : memref<1x!tpu.dma_semaphore, #tpu.memory_space<semaphore_mem>> -> memref<!tpu.dma_semaphore, #tpu.memory_space<semaphore_mem>>
    tpu.wait_dma2 semaphore(%20 : memref<!tpu.dma_semaphore, #tpu.memory_space<semaphore_mem>>) src(%16 : memref<8x256xf32, #tpu.memory_space<any>>) dst(%18 : memref<8x256xf32, #tpu.memory_space<vmem>>)
    %c1_i32_8 = arith.constant 1 : i32
    %21 = arith.addi %arg1, %c1_i32_8 : i32
    %c1_i32_9 = arith.constant 1 : i32
    %22 = arith.cmpi slt, %21, %c1_i32_9 : i32
    %23 = arith.extui %22 : i1 to i32
    %c0_i32_10 = arith.constant 0 : i32
    %24 = arith.cmpi ne, %23, %c0_i32_10 : i32
    scf.if %24 {
      %c1_i32_27 = arith.constant 1 : i32
      %46 = arith.addi %arg1, %c1_i32_27 : i32
      %c1_i32_28 = arith.constant 1 : i32
      %47 = arith.subi %c1_i32_28, %9 : i32
      %c128_i32_29 = arith.constant 128 : i32
      %48 = arith.muli %46, %c128_i32_29 : i32
      %49 = tpu.assume_multiple %48, 128 : i32
      %c0_i32_30 = arith.constant 0 : i32
      %50 = tpu.memref_slice %arg2[%arg0, %c0_i32_30, %49] : memref<2x8x256xf32, #tpu.memory_space<any>> -> memref<1x8x256xf32, #tpu.memory_space<any>>
      %51 = tpu.memref_squeeze %50 : memref<1x8x256xf32, #tpu.memory_space<any>> -> memref<8x256xf32, #tpu.memory_space<any>>
      %c0_i32_31 = arith.constant 0 : i32
      %c0_i32_32 = arith.constant 0 : i32
      %52 = tpu.memref_slice %arg6[%47, %c0_i32_31, %c0_i32_32] : memref<2x8x256xf32, #tpu.memory_space<vmem>> -> memref<1x8x256xf32, #tpu.memory_space<vmem>>
      %53 = tpu.memref_squeeze %52 : memref<1x8x256xf32, #tpu.memory_space<vmem>> -> memref<8x256xf32, #tpu.memory_space<vmem>>
      %54 = tpu.memref_slice %arg8[%47] : memref<2x!tpu.dma_semaphore, #tpu.memory_space<semaphore_mem>> -> memref<1x!tpu.dma_semaphore, #tpu.memory_space<semaphore_mem>>
      %55 = tpu.memref_squeeze %54 : memref<1x!tpu.dma_semaphore, #tpu.memory_space<semaphore_mem>> -> memref<!tpu.dma_semaphore, #tpu.memory_space<semaphore_mem>>
      tpu.enqueue_dma source(%51 : memref<8x256xf32, #tpu.memory_space<any>>) target(%53 : memref<8x256xf32, #tpu.memory_space<vmem>>) target_semaphore(%55 : memref<!tpu.dma_semaphore, #tpu.memory_space<semaphore_mem>>)
    } else {
    }
    %25 = arith.index_cast %9 : i32 to index
    %c0 = arith.constant 0 : index
    %c0_11 = arith.constant 0 : index
    %26 = vector.load %arg6[%25, %c0, %c0_11] : memref<2x8x256xf32, #tpu.memory_space<vmem>>, vector<1x8x128xf32>
    %27 = vector.shape_cast %26 : vector<1x8x128xf32> to vector<8x128xf32>
    %c0_12 = arith.constant 0 : index
    %c0_13 = arith.constant 0 : index
    %28 = vector.load %arg7[%c0_12, %c0_13] : memref<24x128xf32, #tpu.memory_space<vmem>>, vector<8x128xf32>
    tpu.vector_store %arg7[%c0_12, %c0_13], %27 {strides = array<i32>} : memref<24x128xf32, #tpu.memory_space<vmem>>, vector<8x128xf32>,
    %29 = arith.index_cast %9 : i32 to index
    %c0_14 = arith.constant 0 : index
    %c1 = arith.constant 1 : index
    %30 = vector.load %arg6[%29, %c0_14, %c1] : memref<2x8x256xf32, #tpu.memory_space<vmem>>, vector<1x8x128xf32>
    %31 = vector.shape_cast %30 : vector<1x8x128xf32> to vector<8x128xf32>
    %c8 = arith.constant 8 : index
    %c0_15 = arith.constant 0 : index
    %32 = vector.load %arg7[%c8, %c0_15] : memref<24x128xf32, #tpu.memory_space<vmem>>, vector<8x128xf32>
    tpu.vector_store %arg7[%c8, %c0_15], %31 {strides = array<i32>} : memref<24x128xf32, #tpu.memory_space<vmem>>, vector<8x128xf32>,
    %33 = arith.index_cast %9 : i32 to index
    %c0_16 = arith.constant 0 : index
    %c2 = arith.constant 2 : index
    %34 = vector.load %arg6[%33, %c0_16, %c2] : memref<2x8x256xf32, #tpu.memory_space<vmem>>, vector<1x8x128xf32>
    %35 = vector.shape_cast %34 : vector<1x8x128xf32> to vector<8x128xf32>
    %c16 = arith.constant 16 : index
    %c0_17 = arith.constant 0 : index
    %36 = vector.load %arg7[%c16, %c0_17] : memref<24x128xf32, #tpu.memory_space<vmem>>, vector<8x128xf32>
    tpu.vector_store %arg7[%c16, %c0_17], %35 {strides = array<i32>} : memref<24x128xf32, #tpu.memory_space<vmem>>, vector<8x128xf32>,
    %c0_18 = arith.constant 0 : index
    %c0_19 = arith.constant 0 : index
    %37 = vector.load %arg3[%c0_18, %c0_19] : memref<8x24xf32, #tpu.memory_space<vmem>>, vector<8x24xf32>
    %c0_20 = arith.constant 0 : index
    %c0_21 = arith.constant 0 : index
    %38 = vector.load %arg7[%c0_20, %c0_21] : memref<24x128xf32, #tpu.memory_space<vmem>>, vector<24x128xf32>
    %cst = arith.constant dense<0.000000e+00> : vector<8x128xf32>
    %39 = tpu.matmul %37, %38, %cst {dimension_numbers = #tpu.dot_dimension_numbers<[1], [0], [0], [1], [0, 0, 1, 1], [], []>} : vector<8x24xf32>, vector<24x128xf32>, vector<8x128xf32> -> vector<8x128xf32>
    %c0_22 = arith.constant 0 : index
    %c0_23 = arith.constant 0 : index
    %40 = vector.load %arg4[%c0_22, %c0_23] : memref<8x1xf32, #tpu.memory_space<vmem>>, vector<8x1xf32>
    %41 = vector.broadcast %40 : vector<8x1xf32> to vector<8x128xf32>
    %42 = arith.addf %39, %41 : vector<8x128xf32>
    %c0_24 = arith.constant 0 : index
    %c0_25 = arith.constant 0 : index
    %c0_26 = arith.constant 0 : index
    %43 = vector.load %arg5[%c0_24, %c0_25, %c0_26] : memref<1x8x128xf32, #tpu.memory_space<vmem>>, vector<1x8x128xf32>
    %44 = vector.shape_cast %43 : vector<1x8x128xf32> to vector<8x128xf32>
    %45 = vector.shape_cast %42 : vector<8x128xf32> to vector<1x8x128xf32>
    tpu.vector_store %arg5[%c0_24, %c0_25, %c0_26], %45 {strides = array<i32>} : memref<1x8x128xf32, #tpu.memory_space<vmem>>, vector<1x8x128xf32>,
    return
  }
  func.func @transform_1(%arg0: i32, %arg1: i32) -> (i32, i32) {
    %c0_i32 = arith.constant 0 : i32
    %c0_i32_0 = arith.constant 0 : i32
    %c0_i32_1 = arith.constant 0 : i32
    return %c0_i32, %c0_i32_0 : i32, i32
  }
  func.func @transform_2(%arg0: i32, %arg1: i32) -> (i32, i32) {
    %c0_i32 = arith.constant 0 : i32
    %c0_i32_0 = arith.constant 0 : i32
    %c0_i32_1 = arith.constant 0 : i32
    return %c0_i32, %c0_i32_0 : i32, i32
  }
  func.func @transform_3(%arg0: i32, %arg1: i32) -> (i32, i32, i32) {
    %c0_i32 = arith.constant 0 : i32
    %c0_i32_0 = arith.constant 0 : i32
    return %arg0, %c0_i32, %arg1 : i32, i32, i32
  }
}

</mosaic_0001>

<bundles_post_ra>
// kernel: lora_conv1d_forward.1
= control target key start
LH: loop header
LB: loop body
LE: loop exit
PB: predicated region body
PF: predicated region fallthrough
CT: control target
= control target key end

     0   :  { %8 = vsyncpa [#allocation6], 0  ;;  %s711_s0 = inlined_call_operand.vmem [shape: f32[2,8,256], index: 0, kind: input, shape index: {}]   ;;  %s712_s1 = inlined_call_operand.vmem [shape: f32[8,24], index: 1, kind: input, shape index: {}]   ;;  %s713_s2 = inlined_call_operand.vmem [shape: f32[8,1], index: 2, kind: input, shape index: {}]   ;;  %s714_s3 = inlined_call_operand.hbm [shape: f32[2,8,128], index: 3, kind: output, shape index: {}]  }
   0x1   :  { %10 = vsyncpa [#allocation6 + $0x1], 0  ;;  %s598_s12 = smov 0   ;;  %s600_s13 = smov 0  }
   0x2   :  { %s602_s14 = smov 0   ;;  %s604_s15 = smov 0  }
   0x3   :  { %s606_s16 = smov 0   ;;  %s608_s17 = smov 0  }
   0x4 LB: > { %s402_s18 = sadd.s32 4294967295, %s573_s17   ;;  %s403_s19 = sadd.s32 4294967294, %s573_s17   ;;  %s573_s17 = sphi %s608_s17, %s16_s17   ;;  %s569_s16 = sphi %s606_s16, %s721_s16   ;;  %s565_s15 = sphi %s604_s15, %s720_s15   ;;  %s561_s14 = sphi %s602_s14, %s719_s14   ;;  %s557_s13 = sphi %s600_s13, %s718_s13   ;;  %s553_s12 = sphi %s598_s12, %s717_s12  }
   0x5   : > { %s28_s20 = sadd.s32 1, %s569_s16  ;;  %s79_s21 = sadd.s32 1, %s561_s14 }
   0x6   : > { %p30_p0 = scmp.ge.s32.totalorder %s28_s20, 2  ;;  %p89_p1 = scmp.ne.s32.totalorder %s561_s14, %s557_s13 }
   0x7   : > { %p90_p2 = scmp.eq.s32.totalorder %s402_s18, 1  ;;  %p95_p3 = scmp.ne.s32.totalorder %s557_s13, %s553_s12 }
   0x8   : > { %s723_s20 = smov (%p30_p0, %s28_s20), 0  ;;  %p96_p5 = scmp.eq.s32.totalorder %s403_s19, 1 }
   0x9   : > { %p638_p4 = por %p90_p2, %p89_p1  ;;  %s74_s23 = ssub.s32 %s569_s16, %s723_s20 }
   0xa   : > { %p405_p6 = scmp.ge.s32.totalorder %s573_s17, 1  ;;  %p77_p7 = scmp.eq.s32.totalorder %s74_s23, 0 }
   0xb   : > { %p645_p8 = por %p96_p5, %p95_p3  ;;  %p120_p9 = scmp.lt.s32.totalorder %s573_s17, 3 }
   0xc   : > { %s651_s25 = scalar_select %p77_p7, %s561_s14, %s79_s21  }
   0xd   : > { %p121_p10 = pnand %p405_p6, %p120_p9 }
   0xe   : > { %s134_s26 = sand.u32 (!%p121_p10), 1, %s557_s13   ;;  %s420_s27 = sshll.u32 (!%p121_p10), %s565_s15, 4 }
   0xf   : > { %124 = sbr.rel (%p121_p10) target bundleno = 284 (0x11c), region = 28  ;;  %s657_s28 = sshll.u32 (!%p121_p10), %s134_s26, 3 }
  0x10   : > { %s159_s4 = scalar_lea.vmem (!%p121_p10), %s711_s0, %s420_s27  ;;  %s136_s5 = scalar_lea.vmem (!%p121_p10), [#allocation5], %s657_s28 }
  0x14   : > { %v174_v0 = vld [vmem:[%s159_s4] sm:$0xff]  ;;  %v176_v1 = vld [vmem:[%s159_s4 + $0x8] sm:$0xff] }
  0x15   : > { %183 = vsyncadd [#allocation4], 256  ;;  %v481_v2 = vpack.i.bf16 %v176_v1, %v174_v0 }
  0x16   : > { %545 = dma.done.wait [#allocation4], 256 }
  0x17   : > { %546 = vsyncadd [#allocation4], 4294967040  ;;  %s575_s6 = smov 126   ;;  %s576_s7 = smov 127   ;;  %v260_v3 = vld [vmem:[%s713_s2] sm:$0xff]  ;;  %v577_v4 = vmov 0  }
  0x18   : > { %482 = vrot.lane.b32.xlu0 %v481_v2, %s575_s6  ;;  %491 = vset.pattern.permute.xlu1 %v577_v4  ;;  %vm252_vm0 = vcmask 1031168   ;;  %vm240_vm1 = vcmask 1039360   ;;  %v256_v13 = vld [vmem:[%s712_s1] sm:$0xff]  ;;  %vm266_vm2 = vcmask 195584   ;;  %s415_s18 = sshll.u32 %s565_s15, 3  ;;  %s305_s27 = sshll.u32 %s136_s5, 4  ;;  %s306_s27 = int_to_ptr.vmem [resolvable:$true] %s305_s27 }
  0x19   : > { %492 = vset.pattern.permute.xlu0 %v577_v4  ;;  %263 = vperm.xlu1 %491, %v260_v3   ;;  %s303_s23 = scalar_lea.hbm %s714_s3, %s415_s18  ;;  %s292_s30 = scalar_lea.sflag [#allocation6], %s134_s26 }
  0x1a   : > { %s307_s29 = sshll.u32 %s303_s23, 4  ;;  %s513_s8 = scalar_lea.hbm %s714_s3, 16  ;;  %s308_s29 = int_to_ptr.hbm [resolvable:$true] %s307_s29 }
  0x1b   : > { %s507_s4 = sshra.s32 %s308_s29, 4  ;;  %s508_s4 = int_to_ptr.hbm [resolvable:$true] %s507_s4 }
  0x1c   : > { %s509_s6 = scalar_lea.hbm %s508_s4, 8  ;;  %p514_p0 = scmp.lt.s32.totalorder %s508_s4, %s714_s3 }
  0x1d   : > { %p510_p11 = scmp.ne.s32.totalorder %s508_s4, %s509_s6  ;;  %p515_p1 = scmp.lt.s32.totalorder %s513_s8, %s509_s6 }
  0x1f   : > { %p511_p12 = pnand %p510_p11, %p638_p4  ;;  %p516_p2 = por %p515_p1, %p514_p0 }
  0x20   : > { %487 = vrot.lane.b32.xlu0 %v481_v2, %s576_s7 }
  0x21   : > { %p512_p13 = pneg %p511_p12 }
  0x23   : > { %p517_p3 = pnand %p516_p2, %p512_p13 }
  0x8a   : > { %v483_v5 = vpop.permute.xlu0 %482 }
  0x8b   : > { %v485_v6 = vunpack.i.h.bf16 %v483_v5  ;;  %v484_v7 = vunpack.i.l.bf16 %v483_v5  ;;  %v264_v14 = vpop.permute.xlu1 %263 }
  0x8d   : > { %v253_v8 = vsel %vm252_vm0, %v484_v7, %v485_v6 }
  0x8e   : > { %283 = vmatpush.msra.mxu0 %v253_v8 }
  0x92   : > { %v488_v9 = vpop.permute.xlu0 %487 }
  0x93   : > { %v490_v10 = vunpack.i.h.bf16 %v488_v9  ;;  %v489_v11 = vunpack.i.l.bf16 %v488_v9 }
  0x95   : > { %v241_v12 = vsel %vm240_vm1, %v489_v11, %v490_v10 }
  0x96   : > { %284 = vmatpush.msra.mxu0 %v241_v12 }
  0x98   : > { %285 = vmatpush.msra.mxu0 %v174_v0 }
  0x99   : > { %413 = vmatmul.msk.f32.vlgmr.msra.gmra.mxu0 %vm266_vm2, %v256_v13 }
 0x116   : > { %v287_v15 = vpop.f32.mrf.mxu0 }
 0x117   : > { %v288_v16 = vadd.f32 %v287_v15, %v264_v14 }
 0x119   : > { %290 = vst [vmem:[%s136_s5] sm:$0xff] %v288_v16 }
 0x11a   : > { %520 = shalt.err (!%p517_p3)
}
 0x11b   : > { %423 = dma.vmem_to_hbm [thread:$0]  (%p638_p4), %s306_s27, 128, %s308_s29, %s292_s30  }
 0x11c PF: > { %p429_p5 = scmp.ge.s32.totalorder %s573_s17, 2  ;;  %s319_s26 = sand.u32 1, %s553_s12  }
 0x11d   : > { %s320_s28 = scalar_lea.sflag [#allocation6], %s319_s26 }
 0x11e   : > { %p426_p6 = pnand %p429_p5, %p645_p8 }
 0x120   : > { %p427_p7 = pneg %p426_p6 }
 0x122   : > { %548 = dma.done.wait (%p427_p7), %s320_s28, 128  }
 0x123   : > { %550 = vsyncadd (%p427_p7), %s320_s28, 4294967168  ;;  %s16_s17 = sadd.s32 1, %s573_s17   ;;  %s717_s12 = smov %s557_s13 }
 0x124   : > { %p13_p9 = scmp.ge.s32.totalorder %s16_s17, 4   ;;  %s718_s13 = smov %s561_s14 }
 0x125   : > { %s719_s14 = smov %s651_s25  ;;  %s720_s15 = smov %s569_s16 }
 0x126   : > { %s721_s16 = smov %s723_s20  ;;  %15 = sbr.rel (!%p13_p9) target bundleno = 4 (0x4), region = 123 }
 0x12b   :  { %326 = vsyncpa [#allocation6], 1 }
 0x12c   :  { %328 = vsyncpa [#allocation6 + $0x1], 1 }
 0x12d   :  { %329 = vsyncmov [#allocation4] }
 0x130   :  { %s330_s22 = vpop.sfrf %329 }
 0x131   :  { %p418_p4 = scmp.ne.s32.totalorder %s330_s22, 0 }
 0x133   :  { %334 = shalt.err (%p418_p4)  }
 0x134   :  { %336 = vsyncmov [#allocation4 + $0x1] }
 0x137   :  { %s337_s24 = vpop.sfrf %336 }
 0x138   :  { %p419_p8 = scmp.ne.s32.totalorder %s337_s24, 0 }
 0x13a   :  { %341 = shalt.err (%p419_p8)  }

</bundles_post_ra>
